<compile_context>
chip_gen: v7x
topology: tpu7x:2x2x1
jax: 0.10.0
libtpu: 0.0.40
codegen_flags: <defaults>
</compile_context>

<pallas_src>
import jax
import jax.numpy as jnp
from jax.experimental import pallas as pl
from jax.experimental.pallas import tpu as pltpu


def _const_fill_kernel(alpha_ref, out_ref):
    # alpha_ref: SMEM (1,) f32 scalar
    # out_ref:   VMEM (tr, H*W) f32 tile of the flattened output slab
    out_ref[...] = jnp.full(out_ref.shape, alpha_ref[0], dtype=out_ref.dtype)


def constant_sim_block(last_featmap, featmap, size, alpha):
    """Pallas equivalent of ConstantSimBlock.forward.

    Args:
      last_featmap: (B, C, H', W') -- unused (matches PyTorch semantics).
      featmap:      (B, C, H', W') -- only its batch dim is used.
      size:         (H, W) static output spatial size.
      alpha:        scalar float32 parameter.

    Returns:
      (B, 1, H, W) float32 array filled with alpha.
    """
    del last_featmap  # unused, as in the reference module
    b = featmap.shape[0]
    h, w = int(size[0]), int(size[1])

    alpha_arr = jnp.asarray(alpha, dtype=jnp.float32).reshape(1)

    # Lane-dense flattened view of the output: (B, H*W). Row-major bytes are
    # identical to (B, 1, H, W), so the trailing reshape is free.
    rows, cols = b, h * w

    # Row tiling: one block if the whole slab is small; otherwise large
    # (~8 MiB) row blocks so double-buffered output stays well within VMEM
    # even on v7x (64 MiB physical / ~32 MiB scoped).
    max_block_bytes = 8 * 1024 * 1024
    total_bytes = rows * cols * 4
    if total_bytes <= max_block_bytes:
        tr = rows
    else:
        tr = max(8, ((max_block_bytes // (cols * 4)) // 8) * 8)
        tr = min(tr, rows)
    grid_r = pl.cdiv(rows, tr)

    out2d = pl.pallas_call(
        _const_fill_kernel,
        out_shape=jax.ShapeDtypeStruct((rows, cols), jnp.float32),
        grid=(grid_r,),
        in_specs=[
            pl.BlockSpec(memory_space=pltpu.SMEM),  # alpha scalar, untiled
        ],
        out_specs=pl.BlockSpec((tr, cols), lambda i: (i, 0)),
        compiler_params=pltpu.CompilerParams(
            dimension_semantics=("parallel",),
        ),
    )(alpha_arr)

    return out2d.reshape(b, 1, h, w)


if __name__ == "__main__":
    key = jax.random.PRNGKey(0)
    k1, k2 = jax.random.split(key)

    # Small shapes consistent with the module's usage: NCHW feature maps.
    B, C, H, W = 2, 4, 16, 16
    last_featmap = jax.random.normal(k1, (B, C, H, W), dtype=jnp.float32)
    featmap = jax.random.normal(k2, (B, C, H, W), dtype=jnp.float32)
    size = (16, 16)

    # Deterministic parameter, matching e.g. nn.Parameter(torch.tensor(0.5)).
    alpha = jnp.float32(0.5)

    sim = constant_sim_block(last_featmap, featmap, size, alpha)
    sim = jax.block_until_ready(sim)

    # Reference check: ones((B,1,H,W)) * alpha
    ref = jnp.ones((B, 1, size[0], size[1]), dtype=jnp.float32) * alpha
    assert sim.shape == (B, 1, size[0], size[1])
    assert sim.dtype == jnp.float32
    assert bool(jnp.allclose(sim, ref))

    print("KERNEL_OK")
</pallas_src>

<mosaic_0001>
module attributes {stable_mosaic.version = 11 : i64} {
  func.func @_const_fill_kernel(%arg0: i32, %arg1: memref<1xf32, #tpu.memory_space<smem>>, %arg2: memref<2x256xf32, #tpu.memory_space<vmem>>) attributes {dimension_semantics = [#tpu.dimension_semantics<parallel>], iteration_bounds = array<i64: 1>, scalar_prefetch = 0 : i64, scratch_operands = 0 : i64, tpu.core_type = #tpu.core_type<tc>, window_params = [{transform_indices = @transform_0, window_bounds = array<i64: 1>}, {transform_indices = @transform_1, window_bounds = array<i64: 2, 256>}]} {
    %c0 = arith.constant 0 : index
    %0 = memref.load %arg1[%c0] : memref<1xf32, #tpu.memory_space<smem>>
    %1 = vector.broadcast %0 : f32 to vector<2x256xf32>
    %c0_0 = arith.constant 0 : index
    %c0_1 = arith.constant 0 : index
    %2 = vector.load %arg2[%c0_0, %c0_1] : memref<2x256xf32, #tpu.memory_space<vmem>>, vector<2x256xf32>
    tpu.vector_store %arg2[%c0_0, %c0_1], %1 {strides = array<i32>} : memref<2x256xf32, #tpu.memory_space<vmem>>, vector<2x256xf32>,
    return
  }
  func.func @transform_0(%arg0: i32) -> i32 {
    %c0_i32 = arith.constant 0 : i32
    %c0_i32_0 = arith.constant 0 : i32
    return %c0_i32 : i32
  }
  func.func @transform_1(%arg0: i32) -> (i32, i32) {
    %c0_i32 = arith.constant 0 : i32
    %c0_i32_0 = arith.constant 0 : i32
    return %arg0, %c0_i32 : i32, i32
  }
}

</mosaic_0001>

<bundles_post_ra>
// kernel: tpu_custom_call.1
= control target key start
LH: loop header
LB: loop body
LE: loop exit
PB: predicated region body
PF: predicated region fallthrough
CT: control target
= control target key end

     0   :  { %s78_s0 = inlined_call_operand.<no memory space> [shape: f32[1], index: 0, kind: input, shape index: {}]   ;;  %s79_s1 = inlined_call_operand.hbm [shape: f32[2,256], index: 1, kind: output, shape index: {}]  }
   0x1   :  { %v11_v0 = vstv %s78_s0 }
   0x2   :  { %7 = vsyncpa [#allocation4], 0  ;;  %12 = vst [vmem:[#allocation3] sm:$0xf] %v11_v0  ;;  %s52_s8 = smov [#allocation3]  }
   0x3   :  { %s19_s9 = sshll.u32 %s52_s8, 4  ;;  %s20_s9 = int_to_ptr.vmem [resolvable:$true] %s19_s9 }
   0x4   :  { %s28_s10 = scalar_lea.vmem %s20_s9, 64  ;;  %p33_p1 = scmp.lt.s32.totalorder %s20_s9, %s20_s9 }
   0x5   :  { %p29_p0 = scmp.ne.s32.totalorder %s20_s9, %s28_s10  ;;  %p34_p2 = scmp.lt.s32.totalorder %s28_s10, %s28_s10 }
   0x7   :  { %p35_p3 = por %p34_p2, %p33_p1 }
   0x9   :  { %p36_p4 = pnand %p35_p3, %p29_p0 }
   0xb   :  { %39 = shalt.err (!%p36_p4)
}
   0xc   :  { %s40_s13 = scalar_lea.hbm %s79_s1, 64 }
   0xd   :  { %p41_p5 = scmp.ne.s32.totalorder %s79_s1, %s40_s13  ;;  %p44_p6 = scmp.lt.u32.totalorder %s40_s13, %s79_s1 }
   0xf   :  { %p46_p7 = pnand %p44_p6, %p41_p5 }
  0x11   :  { %49 = shalt.err (!%p46_p7)
}
  0x12   :  { %22 = dma.vmem_to_hbm [thread:$0]  %s20_s9, 64, %s79_s1, [#allocation4]  }
  0x13   :  { %50 = dma.done.wait [#allocation4], 64  }
  0x14   :  { %51 = vsyncadd [#allocation4], 4294967232 }
  0x15   :  { %26 = vsyncpa [#allocation4], 1 }

</bundles_post_ra>
